<compile_context>
chip_gen: v7x
topology: tpu7x:2x2x1
jax: 0.10.0
libtpu: 0.0.40
codegen_flags: <defaults>
</compile_context>

<pallas_src>
import math
import jax
import jax.numpy as jnp
from jax import lax
from jax.experimental import pallas as pl
from jax.experimental.pallas import tpu as pltpu


def _round_up(x, m):
    return ((x + m - 1) // m) * m


def attention_kernel(e1_ref, e2_ref, w_ref, u_ref, out_ref, alpha_ref):
    e1 = e1_ref[...]                       # (tn, F)
    e2 = e2_ref[...]                       # (tn, F)
    w = w_ref[...]                         # (F, H)
    u_row = u_ref[...]                     # (1, H)

    # v = tanh(emb @ w_omega) per view; MXU, f32 accumulate, full-f32 passes.
    v1 = jnp.tanh(jnp.dot(e1, w, precision=lax.Precision.HIGHEST,
                          preferred_element_type=jnp.float32))           # (tn, H)
    v2 = jnp.tanh(jnp.dot(e2, w, precision=lax.Precision.HIGHEST,
                          preferred_element_type=jnp.float32))           # (tn, H)

    # Attention logits: VPU multiply + cross-lane (XLU) reduce, not a 1-col matmul.
    s1 = jnp.sum(v1 * u_row, axis=-1, keepdims=True) + 1e-6              # (tn, 1)
    s2 = jnp.sum(v2 * u_row, axis=-1, keepdims=True) + 1e-6              # (tn, 1)

    # 2-way softmax; exact divide so alpha rows sum to 1.
    m = jnp.maximum(s1, s2)
    x1 = jnp.exp(s1 - m)
    x2 = jnp.exp(s2 - m)
    inv = 1.0 / (x1 + x2)
    a1 = x1 * inv                                                         # (tn, 1)
    a2 = x2 * inv                                                         # (tn, 1)

    # emb^T @ alpha  ==  a1*emb1 + a2*emb2 per row (lane-dense main output).
    out_ref[...] = a1 * e1 + a2 * e2                                      # (tn, F)

    # alpha as (tn, 2): lane 0 <- a1, lane 1 <- a2, single full-block store.
    lane = lax.broadcasted_iota(jnp.int32, alpha_ref.shape, 1)
    alpha_ref[...] = jnp.where(lane == 0, a1, a2)


def attention_layer(emb1, emb2, w_omega, u_omega, *, tn=None):
    """emb1, emb2: (N, in_feat) float32.  Returns (combined (N, in_feat), alpha (N, 2))."""
    N, in_feat = emb1.shape
    out_feat = w_omega.shape[1]

    # Generation-aware VMEM sizing (v7x: 64 MiB/TC; v5e/v6e: 128 MiB).
    try:
        vmem_cap = int(pltpu.get_tpu_info().vmem_capacity_bytes)
    except Exception:
        vmem_cap = 64 * 1024 * 1024
    vmem_limit_bytes = int(vmem_cap * 0.75)
    tile_budget = int(vmem_cap * 0.40)
    tn_cap = 2048 if vmem_cap >= 96 * 1024 * 1024 else 1024

    if tn is None:
        # Streamed tiles (double-buffered): emb1 + emb2 in, combined + alpha out.
        stream_bytes_per_row = 2 * (in_feat + in_feat + in_feat + 2) * 4
        # v1/v2 f32 temporaries (single instance).
        temp_bytes_per_row = 2 * out_feat * 4
        # Replicated operands, budgeted as double-buffered.
        # NOTE: pipeline_mode=pl.Buffered(1) on w/u would buy extra headroom for
        # very large feature dims on v7x (constant index_map -> no refetch anyway).
        weight_bytes = 2 * (in_feat * out_feat + out_feat) * 4
        tn = max(128, (tile_budget - weight_bytes) //
                 (stream_bytes_per_row + temp_bytes_per_row))
        tn = min(tn, tn_cap)
        if N > 256:
            # Guarantee >= 2 grid steps so the "parallel" axis can shard across
            # v7x's two TensorCores (no effect on single-TC v5e/v6e).
            tn = min(tn, _round_up(pl.cdiv(N, 2), 128))
        tn = max(128, (tn // 128) * 128)

    # Never let the block exceed the array; keep sublane divisibility otherwise.
    tn = min(tn, N)
    if tn < N:
        tn = max(8, (tn // 8) * 8)

    grid = (pl.cdiv(N, tn),)          # partial tail block is clipped/masked by Pallas
    u_row = u_omega.reshape(1, out_feat)

    out_shapes = (
        jax.ShapeDtypeStruct((N, in_feat), jnp.float32),
        jax.ShapeDtypeStruct((N, 2), jnp.float32),
    )
    combined, alpha = pl.pallas_call(
        attention_kernel,
        out_shape=out_shapes,
        grid_spec=pltpu.PrefetchScalarGridSpec(
            num_scalar_prefetch=0,
            grid=grid,
            in_specs=[
                pl.BlockSpec((tn, in_feat), lambda i: (i, 0)),        # emb1 tile
                pl.BlockSpec((tn, in_feat), lambda i: (i, 0)),        # emb2 tile
                pl.BlockSpec((in_feat, out_feat), lambda i: (0, 0)),  # w_omega (replicated)
                pl.BlockSpec((1, out_feat), lambda i: (0, 0)),        # u_omega as a row
            ],
            out_specs=[
                pl.BlockSpec((tn, in_feat), lambda i: (i, 0)),        # combined
                pl.BlockSpec((tn, 2), lambda i: (i, 0)),              # alpha
            ],
        ),
        compiler_params=pltpu.CompilerParams(
            dimension_semantics=("parallel",),
            vmem_limit_bytes=vmem_limit_bytes,
        ),
    )(emb1, emb2, w_omega, u_row)
    return combined, alpha


def attention_layer_ref(emb1, emb2, w_omega, u_omega):
    """Pure-JAX reference mirroring the PyTorch forward exactly (f32-accurate matmuls)."""
    hp = lax.Precision.HIGHEST
    emb = jnp.stack([emb1, emb2], axis=1)                             # (N, 2, in_feat)
    v = jnp.tanh(jnp.matmul(emb, w_omega, precision=hp))              # (N, 2, out_feat)
    vu = jnp.matmul(v, u_omega, precision=hp)                         # (N, 2, 1)
    alpha = jax.nn.softmax(jnp.squeeze(vu, -1) + 1e-6, axis=-1)       # (N, 2)
    combined = jnp.matmul(jnp.swapaxes(emb, 1, 2), alpha[..., None], precision=hp)
    return jnp.squeeze(combined, -1), alpha


def xavier_uniform(key, shape):
    fan_in, fan_out = shape[0], shape[1]
    bound = math.sqrt(6.0 / (fan_in + fan_out))
    return jax.random.uniform(key, shape, jnp.float32, -bound, bound)


def _run_case(key, N, in_feat, out_feat, tn=None):
    k1, k2, kw, ku = jax.random.split(key, 4)
    emb1 = jax.random.normal(k1, (N, in_feat), jnp.float32)
    emb2 = jax.random.normal(k2, (N, in_feat), jnp.float32)
    w_omega = xavier_uniform(kw, (in_feat, out_feat))
    u_omega = xavier_uniform(ku, (out_feat, 1))

    combined, alpha = attention_layer(emb1, emb2, w_omega, u_omega, tn=tn)
    combined = jax.block_until_ready(combined)
    alpha = jax.block_until_ready(alpha)

    combined_ref, alpha_ref = attention_layer_ref(emb1, emb2, w_omega, u_omega)
    assert combined.shape == (N, in_feat) and alpha.shape == (N, 2)
    assert jnp.allclose(combined, combined_ref, atol=2e-3, rtol=2e-3)
    assert jnp.allclose(alpha, alpha_ref, atol=2e-3, rtol=2e-3)


if __name__ == "__main__":
    key = jax.random.PRNGKey(0)
    ka, kb, kc = jax.random.split(key, 3)

    # Small shapes matching the module; single full-array block, grid of 1.
    _run_case(ka, N=16, in_feat=32, out_feat=32)

    # Auto-sized tiles: >=2 grid steps (v7x megacore path) with a partial tail block.
    _run_case(kb, N=300, in_feat=128, out_feat=64)

    # Explicit tile: grid of 3 with a masked partial tail block (no wrapper padding).
    _run_case(kc, N=300, in_feat=128, out_feat=64, tn=128)

    print("KERNEL_OK")
</pallas_src>

<mosaic_0001>
module attributes {stable_mosaic.version = 11 : i64} {
  func.func @attention_kernel(%arg0: i32, %arg1: memref<16x32xf32, #tpu.memory_space<vmem>>, %arg2: memref<16x32xf32, #tpu.memory_space<vmem>>, %arg3: memref<32x32xf32, #tpu.memory_space<vmem>>, %arg4: memref<1x32xf32, #tpu.memory_space<vmem>>, %arg5: memref<16x32xf32, #tpu.memory_space<vmem>>, %arg6: memref<16x2xf32, #tpu.memory_space<vmem>>) attributes {dimension_semantics = [#tpu.dimension_semantics<parallel>], iteration_bounds = array<i64: 1>, scalar_prefetch = 0 : i64, scratch_operands = 0 : i64, tpu.core_type = #tpu.core_type<tc>, window_params = [{transform_indices = @transform_0, window_bounds = array<i64: 16, 32>}, {transform_indices = @transform_1, window_bounds = array<i64: 16, 32>}, {pipeline_mode = #tpu.pipeline_mode<synchronous>, transform_indices = @transform_2, window_bounds = array<i64: 32, 32>}, {pipeline_mode = #tpu.pipeline_mode<synchronous>, transform_indices = @transform_3, window_bounds = array<i64: 1, 32>}, {transform_indices = @transform_4, window_bounds = array<i64: 16, 32>}, {transform_indices = @transform_5, window_bounds = array<i64: 16, 2>}]} {
    %c0 = arith.constant 0 : index
    %c0_0 = arith.constant 0 : index
    %0 = vector.load %arg1[%c0, %c0_0] : memref<16x32xf32, #tpu.memory_space<vmem>>, vector<16x32xf32>
    %c0_1 = arith.constant 0 : index
    %c0_2 = arith.constant 0 : index
    %1 = vector.load %arg2[%c0_1, %c0_2] : memref<16x32xf32, #tpu.memory_space<vmem>>, vector<16x32xf32>
    %c0_3 = arith.constant 0 : index
    %c0_4 = arith.constant 0 : index
    %2 = vector.load %arg3[%c0_3, %c0_4] : memref<32x32xf32, #tpu.memory_space<vmem>>, vector<32x32xf32>
    %c0_5 = arith.constant 0 : index
    %c0_6 = arith.constant 0 : index
    %3 = vector.load %arg4[%c0_5, %c0_6] : memref<1x32xf32, #tpu.memory_space<vmem>>, vector<1x32xf32>
    %cst = arith.constant dense<0.000000e+00> : vector<16x32xf32>
    %4 = tpu.matmul %0, %2, %cst {dimension_numbers = #tpu.dot_dimension_numbers<[1], [0], [0], [1], [0, 0, 1, 1], [], []>, precision = #tpu.contract_precision<fp32>} : vector<16x32xf32>, vector<32x32xf32>, vector<16x32xf32> -> vector<16x32xf32>
    %5 = math.tanh %4 : vector<16x32xf32>
    %cst_7 = arith.constant dense<0.000000e+00> : vector<16x32xf32>
    %6 = tpu.matmul %1, %2, %cst_7 {dimension_numbers = #tpu.dot_dimension_numbers<[1], [0], [0], [1], [0, 0, 1, 1], [], []>, precision = #tpu.contract_precision<fp32>} : vector<16x32xf32>, vector<32x32xf32>, vector<16x32xf32> -> vector<16x32xf32>
    %7 = math.tanh %6 : vector<16x32xf32>
    %8 = vector.broadcast %3 : vector<1x32xf32> to vector<16x32xf32>
    %9 = arith.mulf %5, %8 : vector<16x32xf32>
    %cst_8 = arith.constant dense<0.000000e+00> : vector<16xf32>
    %10 = vector.multi_reduction <add>, %9, %cst_8 [1] : vector<16x32xf32> to vector<16xf32>
    %11 = vector.shape_cast %10 : vector<16xf32> to vector<16x1xf32>
    %cst_9 = arith.constant 9.99999997E-7 : f32
    %12 = vector.broadcast %cst_9 : f32 to vector<16x1xf32>
    %13 = arith.addf %11, %12 : vector<16x1xf32>
    %14 = vector.broadcast %3 : vector<1x32xf32> to vector<16x32xf32>
    %15 = arith.mulf %7, %14 : vector<16x32xf32>
    %cst_10 = arith.constant dense<0.000000e+00> : vector<16xf32>
    %16 = vector.multi_reduction <add>, %15, %cst_10 [1] : vector<16x32xf32> to vector<16xf32>
    %17 = vector.shape_cast %16 : vector<16xf32> to vector<16x1xf32>
    %cst_11 = arith.constant 9.99999997E-7 : f32
    %18 = vector.broadcast %cst_11 : f32 to vector<16x1xf32>
    %19 = arith.addf %17, %18 : vector<16x1xf32>
    %20 = arith.maximumf %13, %19 : vector<16x1xf32>
    %21 = arith.subf %13, %20 : vector<16x1xf32>
    %22 = math.exp %21 : vector<16x1xf32>
    %23 = arith.subf %19, %20 : vector<16x1xf32>
    %24 = math.exp %23 : vector<16x1xf32>
    %25 = arith.addf %22, %24 : vector<16x1xf32>
    %cst_12 = arith.constant 1.000000e+00 : f32
    %26 = vector.broadcast %cst_12 : f32 to vector<16x1xf32>
    %27 = arith.divf %26, %25 : vector<16x1xf32>
    %28 = arith.mulf %22, %27 : vector<16x1xf32>
    %29 = arith.mulf %24, %27 : vector<16x1xf32>
    %30 = vector.broadcast %28 : vector<16x1xf32> to vector<16x32xf32>
    %31 = arith.mulf %30, %0 : vector<16x32xf32>
    %32 = vector.broadcast %29 : vector<16x1xf32> to vector<16x32xf32>
    %33 = arith.mulf %32, %1 : vector<16x32xf32>
    %34 = arith.addf %31, %33 : vector<16x32xf32>
    %c0_13 = arith.constant 0 : index
    %c0_14 = arith.constant 0 : index
    %35 = vector.load %arg5[%c0_13, %c0_14] : memref<16x32xf32, #tpu.memory_space<vmem>>, vector<16x32xf32>
    tpu.vector_store %arg5[%c0_13, %c0_14], %34 {strides = array<i32>} : memref<16x32xf32, #tpu.memory_space<vmem>>, vector<16x32xf32>,
    %36 = tpu.iota {dimensions = array<i32: 1>} : vector<16x2xi32>
    %c0_i32 = arith.constant 0 : i32
    %37 = vector.broadcast %c0_i32 : i32 to vector<16x2xi32>
    %38 = arith.cmpi eq, %36, %37 : vector<16x2xi32>
    %39 = vector.shape_cast %28 : vector<16x1xf32> to vector<16x1xf32>
    %40 = vector.broadcast %39 : vector<16x1xf32> to vector<16x2xf32>
    %41 = vector.shape_cast %29 : vector<16x1xf32> to vector<16x1xf32>
    %42 = vector.broadcast %41 : vector<16x1xf32> to vector<16x2xf32>
    %43 = arith.select %38, %40, %42 : vector<16x2xi1>, vector<16x2xf32>
    %c0_15 = arith.constant 0 : index
    %c0_16 = arith.constant 0 : index
    %44 = vector.load %arg6[%c0_15, %c0_16] : memref<16x2xf32, #tpu.memory_space<vmem>>, vector<16x2xf32>
    tpu.vector_store %arg6[%c0_15, %c0_16], %43 {strides = array<i32>} : memref<16x2xf32, #tpu.memory_space<vmem>>, vector<16x2xf32>,
    return
  }
  func.func @transform_0(%arg0: i32) -> (i32, i32) {
    %c0_i32 = arith.constant 0 : i32
    %c0_i32_0 = arith.constant 0 : i32
    return %arg0, %c0_i32 : i32, i32
  }
  func.func @transform_1(%arg0: i32) -> (i32, i32) {
    %c0_i32 = arith.constant 0 : i32
    %c0_i32_0 = arith.constant 0 : i32
    return %arg0, %c0_i32 : i32, i32
  }
  func.func @transform_2(%arg0: i32) -> (i32, i32) {
    %c0_i32 = arith.constant 0 : i32
    %c0_i32_0 = arith.constant 0 : i32
    %c0_i32_1 = arith.constant 0 : i32
    return %c0_i32, %c0_i32_0 : i32, i32
  }
  func.func @transform_3(%arg0: i32) -> (i32, i32) {
    %c0_i32 = arith.constant 0 : i32
    %c0_i32_0 = arith.constant 0 : i32
    %c0_i32_1 = arith.constant 0 : i32
    return %c0_i32, %c0_i32_0 : i32, i32
  }
  func.func @transform_4(%arg0: i32) -> (i32, i32) {
    %c0_i32 = arith.constant 0 : i32
    %c0_i32_0 = arith.constant 0 : i32
    return %arg0, %c0_i32 : i32, i32
  }
  func.func @transform_5(%arg0: i32) -> (i32, i32) {
    %c0_i32 = arith.constant 0 : i32
    %c0_i32_0 = arith.constant 0 : i32
    return %arg0, %c0_i32 : i32, i32
  }
}

</mosaic_0001>

<bundles_post_ra>
// kernel: tpu_custom_call.1
= control target key start
LH: loop header
LB: loop body
LE: loop exit
PB: predicated region body
PF: predicated region fallthrough
CT: control target
= control target key end

     0   :  { %11 = vsyncpa [#allocation3], 0  ;;  %s1924_s0 = inlined_call_operand.hbm [shape: f32[16,32], index: 0, kind: input, shape index: {}]   ;;  %s1925_s1 = inlined_call_operand.hbm [shape: f32[16,32], index: 1, kind: input, shape index: {}]   ;;  %s1926_s2 = inlined_call_operand.hbm [shape: f32[32,32], index: 2, kind: input, shape index: {}]   ;;  %s1927_s3 = inlined_call_operand.vmem [shape: f32[1,32], index: 3, kind: input, shape index: {}]   ;;  %s1928_s4 = inlined_call_operand.hbm [shape: f32[16,32], index: 4, kind: output, shape index: {0}]   ;;  %s1929_s5 = inlined_call_operand.vmem [shape: f32[16,2], index: 5, kind: output, shape index: {1}]  }
   0x1   :  { %12 = vsyncpa [#allocation6], 0 }
   0x2   :  { %13 = vsyncpa [#allocation4], 0  ;;  %s1672_s18 = smov [#allocation5]   ;;  %s1673_s20 = smov [#allocation2]  }
   0x3   :  { %s31_s19 = sshll.u32 %s1672_s18, 4  ;;  %s19_s21 = sshll.u32 %s1673_s20, 4  ;;  %s32_s19 = int_to_ptr.vmem [resolvable:$true] %s31_s19  ;;  %s1708_s21 = int_to_ptr.vmem [resolvable:$true] %s19_s21 }
   0x4   :  { %s1578_s24 = scalar_lea.hbm %s1925_s1, 256 }
   0x5   :  { %p1579_p0 = scmp.ne.s32.totalorder %s1925_s1, %s1578_s24  ;;  %p1582_p1 = scmp.lt.u32.totalorder %s1578_s24, %s1925_s1 }
   0x7   :  { %p1584_p2 = pnand %p1582_p1, %p1579_p0 }
   0x9   :  { %1587 = shalt.err (!%p1584_p2)
}
   0xa   :  { %s1588_s29 = scalar_lea.vmem %s32_s19, 256  ;;  %p1593_p4 = scmp.lt.s32.totalorder %s32_s19, %s32_s19 }
   0xb   :  { %p1589_p3 = scmp.ne.s32.totalorder %s32_s19, %s1588_s29  ;;  %p1594_p5 = scmp.lt.s32.totalorder %s1588_s29, %s1588_s29 }
   0xd   :  { %p1595_p6 = por %p1594_p5, %p1593_p4 }
   0xf   :  { %p1596_p7 = pnand %p1595_p6, %p1589_p3 }
  0x11   :  { %1599 = shalt.err (!%p1596_p7)
}
  0x12   :  { %s1674_s30 = smov 128   ;;  %s1675_s6 = smov 8  }
  0x13   :  { %37 = dma.hbm_to_vmem [thread:$0]  %s1925_s1, 256, %s32_s19, [#allocation6], %s1674_s30, %s1674_s30, %s1675_s6  }
  0x14   :  { %s1600_s11 = scalar_lea.hbm %s1924_s0, 256 }
  0x15   :  { %p1601_p8 = scmp.ne.s32.totalorder %s1924_s0, %s1600_s11  ;;  %p1604_p9 = scmp.lt.u32.totalorder %s1600_s11, %s1924_s0 }
  0x17   :  { %p1606_p10 = pnand %p1604_p9, %p1601_p8 }
  0x19   :  { %1609 = shalt.err (!%p1606_p10)
}
  0x1a   :  { %s1610_s16 = scalar_lea.vmem %s1708_s21, 256  ;;  %p1615_p12 = scmp.lt.s32.totalorder %s1708_s21, %s1708_s21 }
  0x1b   :  { %p1611_p11 = scmp.ne.s32.totalorder %s1708_s21, %s1610_s16  ;;  %p1616_p13 = scmp.lt.s32.totalorder %s1610_s16, %s1610_s16 }
  0x1d   :  { %p1617_p0 = por %p1616_p13, %p1615_p12 }
  0x1f   :  { %p1618_p1 = pnand %p1617_p0, %p1611_p11 }
  0x21   :  { %1621 = shalt.err (!%p1618_p1)
}
  0x22   :  { %25 = dma.hbm_to_vmem [thread:$0]  %s1924_s0, 256, %s1708_s21, [#allocation3], %s1674_s30, %s1674_s30, %s1675_s6  }
  0x23   :  { %s1676_s18 = smov [#allocation7]   ;;  %s1622_s23 = scalar_lea.hbm %s1926_s2, 512 }
  0x24   :  { %s43_s19 = sshll.u32 %s1676_s18, 4  ;;  %p1623_p2 = scmp.ne.s32.totalorder %s1926_s2, %s1622_s23  ;;  %s44_s19 = int_to_ptr.vmem [resolvable:$true] %s43_s19 }
  0x25   :  { %p1626_p3 = scmp.lt.u32.totalorder %s1622_s23, %s1926_s2 }
  0x27   :  { %p1628_p4 = pnand %p1626_p3, %p1623_p2 }
  0x29   :  { %1631 = shalt.err (!%p1628_p4)
}
  0x2a   :  { %s1632_s28 = scalar_lea.vmem %s44_s19, 512  ;;  %p1637_p6 = scmp.lt.s32.totalorder %s44_s19, %s44_s19 }
  0x2b   :  { %p1633_p5 = scmp.ne.s32.totalorder %s44_s19, %s1632_s28  ;;  %p1638_p7 = scmp.lt.s32.totalorder %s1632_s28, %s1632_s28 }
  0x2d   :  { %p1639_p8 = por %p1638_p7, %p1637_p6 }
  0x2f   :  { %p1640_p9 = pnand %p1639_p8, %p1633_p5 }
  0x31   :  { %1643 = shalt.err (!%p1640_p9)
}
  0x32   :  { %49 = dma.hbm_to_vmem [thread:$0]  %s1926_s2, 512, %s44_s19, [#allocation6], %s1674_s30, %s1674_s30, %s1675_s6  }
  0x33   :  { %1666 = dma.done.wait [#allocation3], 256  }
  0x34   :  { %1667 = vsyncadd [#allocation3], 4294967040 }
  0x35   :  { %1668 = dma.done.wait [#allocation6], 768  }
  0x36   :  { %1669 = vsyncadd [#allocation6], 4294966528  ;;  %vm70_vm0 = vcmask 261120   ;;  %v65_v0 = vld [vmem:[#allocation7] sm:$0xff]  ;;  %v66_v1 = vld [vmem:[#allocation7 + $0x8] sm:$0xff]  ;;  %vm1206_vm2 = vcmask 15360  }
  0x37   :  { %v67_v2 = vld [vmem:[#allocation7 + $0x10] sm:$0xff]  ;;  %v78_v3 = vand.u32 4294901760, %v65_v0  ;;  %v81_v4 = vand.u32 4294901760, %v66_v1  ;;  %v68_v5 = vld [vmem:[#allocation7 + $0x18] sm:$0xff]  ;;  %v1760_v7 = vld [vmem:[#allocation2] sm:$0xff]  ;;  %s1677_s8 = smov [#allocation8]  }
  0x38   :  { %v84_v6 = vand.u32 4294901760, %v67_v2  ;;  %v1762_v8 = vld [vmem:[#allocation5] sm:$0xff]  ;;  %v87_v9 = vand.u32 4294901760, %v68_v5  ;;  %v72_v10 = vsel %vm70_vm0, %v1760_v7, 0  ;;  %v1768_v12 = vld [vmem:[#allocation2 + $0x8] sm:$0xff]  ;;  %v1770_v13 = vld [vmem:[#allocation5 + $0x8] sm:$0xff] }
  0x39   :  { %v608_v11 = vsel %vm70_vm0, %v1762_v8, 0  ;;  %v1772_v14 = vpack.c.bf16 %v81_v4, %v78_v3  ;;  %v1774_v15 = vand.u32 4294901760, %v72_v10  ;;  %v75_v17 = vsel %vm70_vm0, %v1768_v12, 0  ;;  %s1214_s9 = sshll.u32 %s1677_s8, 4  ;;  %s1215_s9 = int_to_ptr.vmem [resolvable:$true] %s1214_s9 }
  0x3a   :  { %v1776_v16 = vand.u32 4294901760, %v608_v11  ;;  %v1780_v18 = vpack.c.bf16 %v87_v9, %v84_v6  ;;  %v1782_v19 = vand.u32 4294901760, %v75_v17  ;;  %v1784_v20 = vsub.f32 %v65_v0, %v78_v3  ;;  %v1231_v0 = vld [vmem:[%s1927_s3] ss:$0 sm:$0xff]  ;;  %s1644_s12 = scalar_lea.vmem %s1215_s9, 256  ;;  %p1649_p11 = scmp.lt.s32.totalorder %s1215_s9, %s1215_s9 }
  0x3b   :  { %v1786_v21 = vsub.f32 %v66_v1, %v81_v4  ;;  %1437 = vmatprep.subr.bf16.mxu0 %v1772_v14  ;;  %1485 = vmatprep.subr.bf16.mxu1 %v1772_v14  ;;  %v1791_v22 = vsub.f32 %v72_v10, %v1774_v15  ;;  %v611_v24 = vsel %vm70_vm0, %v1770_v13, 0  ;;  %v1798_v25 = vsub.f32 %v67_v2, %v84_v6  ;;  %p1645_p10 = scmp.ne.s32.totalorder %s1215_s9, %s1644_s12  ;;  %p1650_p12 = scmp.lt.s32.totalorder %s1644_s12, %s1644_s12 }
  0x3c   :  { %v1794_v23 = vsub.f32 %v608_v11, %v1776_v16  ;;  %1439 = vmatpush3.bf16.msra.mxu0 %v1772_v14  ;;  %1487 = vmatpush3.bf16.msra.mxu1 %v1772_v14  ;;  %v1803_v26 = vsub.f32 %v75_v17, %v1782_v19  ;;  %v169_v27 = vand.u32 4294901760, %v1784_v20  ;;  %v1807_v29 = vand.u32 4294901760, %v611_v24 }
  0x3d   :  { %v176_v28 = vand.u32 4294901760, %v1786_v21  ;;  %1441 = vmatprep.subr.bf16.mxu0 %v1780_v18  ;;  %1489 = vmatprep.subr.bf16.mxu1 %v1780_v18  ;;  %v148_v30 = vand.u32 4294901760, %v1791_v22  ;;  %v183_v32 = vand.u32 4294901760, %v1798_v25  ;;  %v1814_v33 = vsub.f32 %v68_v5, %v87_v9  ;;  %p1651_p13 = por %p1650_p12, %p1649_p11 }
  0x3e   :  { %v684_v31 = vand.u32 4294901760, %v1794_v23  ;;  %v158_v34 = vand.u32 4294901760, %v1803_v26  ;;  %v170_v35 = vsub.f32 %v1784_v20, %v169_v27  ;;  %v1824_v37 = vsub.f32 %v611_v24, %v1807_v29 }
  0x3f   :  { %v177_v36 = vsub.f32 %v1786_v21, %v176_v28  ;;  %v149_v38 = vsub.f32 %v1791_v22, %v148_v30  ;;  %v184_v40 = vsub.f32 %v1798_v25, %v183_v32  ;;  %v190_v41 = vand.u32 4294901760, %v1814_v33  ;;  %p1652_p0 = pnand %p1651_p13, %p1645_p10 }
  0x40   :  { %v685_v39 = vsub.f32 %v1794_v23, %v684_v31  ;;  %1443 = vmatpush3.bf16.msra.mxu0 %v1780_v18  ;;  %1491 = vmatpush3.bf16.msra.mxu1 %v1780_v18  ;;  %v159_v42 = vsub.f32 %v1803_v26, %v158_v34  ;;  %v171_v43 = vand.u32 4294901760, %v170_v35  ;;  %v694_v45 = vand.u32 4294901760, %v1824_v37 }
  0x41   :  { %v178_v44 = vand.u32 4294901760, %v177_v36  ;;  %v150_v46 = vand.u32 4294901760, %v149_v38  ;;  %v185_v48 = vand.u32 4294901760, %v184_v40  ;;  %v191_v49 = vsub.f32 %v1814_v33, %v190_v41 }
  0x42   :  { %v686_v47 = vand.u32 4294901760, %v685_v39  ;;  %v160_v50 = vand.u32 4294901760, %v159_v42  ;;  %v695_v52 = vsub.f32 %v1824_v37, %v694_v45  ;;  %v1452_v56 = vpack.c.bf16 %v1786_v21, %v1784_v20 }
  0x43   :  { %v1444_v51 = vpack.c.bf16 %v178_v44, %v171_v43  ;;  %1312 = vmatprep.mubr.f32.mxu0 %v150_v46  ;;  %v192_v53 = vand.u32 4294901760, %v191_v49  ;;  %v1456_v57 = vpack.c.bf16 %v1814_v33, %v1798_v25  ;;  %v1468_v58 = vpack.c.bf16 %v176_v28, %v169_v27 }
  0x44   :  { %1378 = vmatprep.mubr.f32.mxu1 %v686_v47  ;;  %1313 = vmatmul.mubr.f32.vlgmr.msra.gmra.mrb[0].mxu0 %v160_v50  ;;  %v696_v54 = vand.u32 4294901760, %v695_v52  ;;  %v1472_v59 = vpack.c.bf16 %v190_v41, %v183_v32  ;;  %v1201_v41 = vlaneseq }
  0x45   :  { %1445 = vmatprep.subr.bf16.mxu0 %v1444_v51  ;;  %1493 = vmatprep.subr.bf16.mxu1 %v1444_v51  ;;  %v1448_v55 = vpack.c.bf16 %v192_v53, %v185_v48 }
  0x46   :  { %1447 = vmatpush3.bf16.msra.mxu0 %v1444_v51  ;;  %1379 = vmatmul.mubr.f32.vlgmr.msra.gmra.mrb[0].mxu1 %v696_v54  ;;  %v1202_v42 = vand.u32 127, %v1201_v41 }
  0x47   :  { %1323 = vmatprep.mubr.f32.mxu0 %v1774_v15  ;;  %1495 = vmatpush3.bf16.msra.mxu1 %v1444_v51 }
  0x48   :  { %1449 = vmatprep.subr.bf16.mxu0 %v1448_v55  ;;  %1497 = vmatprep.subr.bf16.mxu1 %v1448_v55  ;;  %vm1203_vm1 = vcmp.eq.s32.totalorder %v1202_v42, 0 }
  0x49   :  { %1389 = vmatprep.mubr.f32.mxu1 %v1776_v16 }
  0x4a   :  { %1451 = vmatpush3.bf16.msra.mxu0 %v1448_v55 }
  0x4b   :  { %1453 = vmatprep.subr.bf16.mxu0 %v1452_v56  ;;  %1499 = vmatpush3.bf16.msra.mxu1 %v1448_v55 }
  0x4c   :  { %1501 = vmatprep.subr.bf16.mxu1 %v1452_v56 }
  0x4d   :  { %1324 = vmatmul.mubr.f32.vlgmr.msra.gmra.mrb[0].mxu0 %v1782_v19 }
  0x4e   :  { %1455 = vmatpush3.bf16.msra.mxu0 %v1452_v56  ;;  %1334 = vmatprep.mubr.f32.mxu0 %v1791_v22 }
  0x4f   :  { %1390 = vmatmul.mubr.f32.vlgmr.msra.gmra.mrb[0].mxu1 %v1807_v29  ;;  %1457 = vmatprep.subr.bf16.mxu0 %v1456_v57 }
  0x50   :  { %1503 = vmatpush3.bf16.msra.mxu1 %v1452_v56  ;;  %1400 = vmatprep.mubr.f32.mxu1 %v1794_v23 }
  0x51   :  { %1505 = vmatprep.subr.bf16.mxu1 %v1456_v57 }
  0x52   :  { %1459 = vmatpush3.bf16.msra.mxu0 %v1456_v57 }
  0x53   :  { %1461 = vmatprep.subr.bf16.mxu0 %v1772_v14 }
  0x54   :  { %1507 = vmatpush3.bf16.msra.mxu1 %v1456_v57 }
  0x55   :  { %1335 = vmatmul.mubr.f32.vlgmr.msra.gmra.mrb[0].mxu0 %v1803_v26  ;;  %1509 = vmatprep.subr.bf16.mxu1 %v1772_v14 }
  0x56   :  { %1463 = vmatpush3.bf16.msra.mxu0 %v1772_v14  ;;  %1345 = vmatprep.mubr.f32.mxu0 %v148_v30 }
  0x57   :  { %1401 = vmatmul.mubr.f32.vlgmr.msra.gmra.mrb[0].mxu1 %v1824_v37  ;;  %1465 = vmatprep.subr.bf16.mxu0 %v1780_v18 }
  0x58   :  { %1511 = vmatpush3.bf16.msra.mxu1 %v1772_v14  ;;  %1411 = vmatprep.mubr.f32.mxu1 %v684_v31 }
  0x59   :  { %1513 = vmatprep.subr.bf16.mxu1 %v1780_v18 }
  0x5a   :  { %1467 = vmatpush3.bf16.msra.mxu0 %v1780_v18 }
  0x5b   :  { %1469 = vmatprep.subr.bf16.mxu0 %v1468_v58 }
  0x5c   :  { %1515 = vmatpush3.bf16.msra.mxu1 %v1780_v18 }
  0x5d   :  { %1346 = vmatmul.mubr.f32.vlgmr.msra.gmra.mrb[0].mxu0 %v158_v34  ;;  %1517 = vmatprep.subr.bf16.mxu1 %v1468_v58 }
  0x5e   :  { %1471 = vmatpush3.bf16.msra.mxu0 %v1468_v58  ;;  %1356 = vmatprep.mubr.f32.mxu0 %v1774_v15 }
  0x5f   :  { %1412 = vmatmul.mubr.f32.vlgmr.msra.gmra.mrb[0].mxu1 %v694_v45  ;;  %1473 = vmatprep.subr.bf16.mxu0 %v1472_v59 }
  0x60   :  { %1519 = vmatpush3.bf16.msra.mxu1 %v1468_v58  ;;  %1422 = vmatprep.mubr.f32.mxu1 %v1776_v16 }
  0x61   :  { %1521 = vmatprep.subr.bf16.mxu1 %v1472_v59 }
  0x62   :  { %1475 = vmatpush3.bf16.msra.mxu0 %v1472_v59 }
  0x63   :  { %1477 = vmatprep.subr.bf16.mxu0 %v1772_v14 }
  0x64   :  { %1523 = vmatpush3.bf16.msra.mxu1 %v1472_v59 }
  0x65   :  { %1357 = vmatmul.mubr.f32.vlgmr.msra.gmra.mrb[0].mxu0 %v1782_v19  ;;  %1525 = vmatprep.subr.bf16.mxu1 %v1772_v14 }
  0x66   :  { %1479 = vmatpush3.bf16.msra.mxu0 %v1772_v14  ;;  %1367 = vmatprep.mubr.f32.mxu0 %v1774_v15 }
  0x67   :  { %1423 = vmatmul.mubr.f32.vlgmr.msra.gmra.mrb[0].mxu1 %v1807_v29  ;;  %1481 = vmatprep.subr.bf16.mxu0 %v1780_v18 }
  0x68   :  { %1527 = vmatpush3.bf16.msra.mxu1 %v1772_v14  ;;  %1433 = vmatprep.mubr.f32.mxu1 %v1776_v16 }
  0x69   :  { %1529 = vmatprep.subr.bf16.mxu1 %v1780_v18 }
  0x6a   :  { %1483 = vmatpush3.bf16.msra.mxu0 %v1780_v18 }
  0x6c   :  { %1531 = vmatpush3.bf16.msra.mxu1 %v1780_v18 }
  0x6d   :  { %1368 = vmatmul.mubr.f32.vlgmr.msra.gmra.mrb[0].mxu0 %v1782_v19 }
  0x6f   :  { %1434 = vmatmul.mubr.f32.vlgmr.msra.gmra.mrb[0].mxu1 %v1807_v29 }
 0x140   :  { %v1369_v60 = vpop.f32.mrb[0].mxu0 }
 0x141   :  { %1558 = vtanh.f32 %v1369_v60  ;;  %v595_v61 = vpop.f32.mrb[1].mxu0 }
 0x142   :  { %v1435_v62 = vpop.f32.mrb[0].mxu1  ;;  %1560 = vtanh.f32 %v595_v61 }
 0x143   :  { %1562 = vtanh.f32 %v1435_v62  ;;  %v1131_v63 = vpop.f32.mrb[1].mxu1 }
 0x144   :  { %1564 = vtanh.f32 %v1131_v63 }
 0x14b   :  { %v1559_v1 = vpop.eup %1558 }
 0x14c   :  { %v1561_v2 = vpop.eup %1560  ;;  %v1150_v10 = vmul.f32 %v1559_v1, %v1231_v0 }
 0x14d   :  { %v1563_v3 = vpop.eup %1562  ;;  %v1149_v4 = vmul.f32 %v1561_v2, %v1231_v0 }
 0x14e   :  { %v1565_v5 = vpop.eup %1564  ;;  %v1160_v14 = vmul.f32 %v1563_v3, %v1231_v0  ;;  %v1154_v15 = vsel %vm70_vm0, %v1150_v10, 0.0 }
 0x14f   :  { %v1159_v6 = vmul.f32 %v1565_v5, %v1231_v0  ;;  %v1151_v9 = vsel %vm70_vm0, %v1149_v4, 0.0 }
 0x150   :  { %1152 = vadd.xlane.f32.xlu0 %v1151_v9  ;;  %v1164_v16 = vsel %vm70_vm0, %v1160_v14, 0.0 }
 0x151   :  { %v1161_v11 = vsel %vm70_vm0, %v1159_v6, 0.0 }
 0x152   :  { %1162 = vadd.xlane.f32.xlu1 %v1161_v11 }
 0x154   :  { %1155 = vadd.xlane.f32.xlu0 %v1154_v15 }
 0x156   :  { %1165 = vadd.xlane.f32.xlu1 %v1164_v16 }
 0x1dd   :  { %v1153_v17 = vpop.xlane.xlu0 %1152 }
 0x1de   :  { %v1157_v18 = vadd.f32 1e-06, %v1153_v17 }
 0x1df   :  { %v1163_v19 = vpop.xlane.xlu1 %1162 }
 0x1e0   :  { %v1167_v20 = vadd.f32 1e-06, %v1163_v19 }
 0x1e1   :  { %v1156_v21 = vpop.xlane.xlu0 %1155 }
 0x1e2   :  { %v1169_v22 = vmax.f32 %v1157_v18, %v1167_v20  ;;  %v1158_v23 = vadd.f32 1e-06, %v1156_v21 }
 0x1e3   :  { %v1166_v24 = vpop.xlane.xlu1 %1165 }
 0x1e4   :  { %v1171_v25 = vsub.f32 %v1157_v18, %v1169_v22  ;;  %v1177_v26 = vsub.f32 %v1167_v20, %v1169_v22  ;;  %v1168_v27 = vadd.f32 1e-06, %v1166_v24 }
 0x1e6   :  { %v1173_v28 = vmul.f32 1.442695, %v1171_v25  ;;  %v1179_v29 = vmul.f32 1.442695, %v1177_v26  ;;  %v1170_v30 = vmax.f32 %v1158_v23, %v1168_v27 }
 0x1e8   :  { %1566 = vpow2.f32 %v1173_v28  ;;  %v1172_v31 = vsub.f32 %v1158_v23, %v1170_v30  ;;  %v1178_v32 = vsub.f32 %v1168_v27, %v1170_v30 }
 0x1e9   :  { %1568 = vpow2.f32 %v1179_v29 }
 0x1ea   :  { %v1175_v33 = vmul.f32 1.442695, %v1172_v31  ;;  %v1181_v34 = vmul.f32 1.442695, %v1178_v32 }
 0x1ec   :  { %1570 = vpow2.f32 %v1175_v33 }
 0x1ed   :  { %1572 = vpow2.f32 %v1181_v34 }
 0x1f2   :  { %v1567_v35 = vpop.eup %1566 }
 0x1f3   :  { %v1569_v36 = vpop.eup %1568 }
 0x1f4   :  { %v1183_v37 = vadd.f32 %v1569_v36, %v1567_v35 }
 0x1f6   :  { %v1571_v38 = vpop.eup %1570  ;;  %1574 = vrcp.f32 %v1183_v37 }
 0x1f7   :  { %v1573_v39 = vpop.eup %1572 }
 0x1f8   :  { %v1184_v40 = vadd.f32 %v1573_v39, %v1571_v38 }
 0x1fa   :  { %1576 = vrcp.f32 %v1184_v40 }
 0x200   :  { %v1575_v43 = vpop.eup %1574 }
 0x201   :  { %v1189_v44 = vmul.f32 %v1575_v43, %v1567_v35  ;;  %v1191_v45 = vmul.f32 %v1575_v43, %v1569_v36 }
 0x203   :  { %v1193_v46 = vmul.f32 %v1189_v44, %v1760_v7  ;;  %v1195_v47 = vmul.f32 %v1191_v45, %v1762_v8  ;;  %v1204_v48 = vsel %vm1203_vm1, %v1189_v44, %v1191_v45 }
 0x204   :  { %v1577_v49 = vpop.eup %1576  ;;  %1207 = vst.msk [vmem:[%s1929_s5] sm:$0xff] %vm1206_vm2, %v1204_v48 }
 0x205   :  { %v1190_v50 = vmul.f32 %v1577_v49, %v1571_v38  ;;  %v1192_v51 = vmul.f32 %v1577_v49, %v1573_v39  ;;  %v1197_v52 = vadd.f32 %v1195_v47, %v1193_v46 }
 0x207   :  { %v1194_v53 = vmul.f32 %v1190_v50, %v1768_v12  ;;  %v1196_v54 = vmul.f32 %v1192_v51, %v1770_v13  ;;  %1199 = vst.msk [vmem:[#allocation8] sm:$0xff] %vm70_vm0, %v1197_v52  ;;  %v1205_v7 = vsel %vm1203_vm1, %v1190_v50, %v1192_v51 }
 0x208   :  { %1208 = vst.msk [vmem:[%s1929_s5 + $0x8] sm:$0xff] %vm1206_vm2, %v1205_v7 }
 0x209   :  { %v1198_v8 = vadd.f32 %v1196_v54, %v1194_v53 }
 0x20b   :  { %1200 = vst.msk [vmem:[#allocation8 + $0x8] sm:$0xff] %vm70_vm0, %v1198_v8 }
 0x20c   :  { %1655 = shalt.err (!%p1652_p0)
}
 0x20d   :  { %s1656_s15 = scalar_lea.hbm %s1928_s4, 256 }
 0x20e   :  { %p1657_p1 = scmp.ne.s32.totalorder %s1928_s4, %s1656_s15  ;;  %p1660_p2 = scmp.lt.u32.totalorder %s1656_s15, %s1928_s4 }
 0x210   :  { %p1662_p3 = pnand %p1660_p2, %p1657_p1 }
 0x212   :  { %1665 = shalt.err (!%p1662_p3)
}
 0x213   :  { %1220 = dma.vmem_to_hbm [thread:$0]  %s1215_s9, 256, %s1928_s4, [#allocation4], %s1674_s30, %s1674_s30, %s1675_s6  }
 0x214   :  { %1670 = dma.done.wait [#allocation4], 256  }
 0x215   :  { %1671 = vsyncadd [#allocation4], 4294967040 }
 0x216   :  { %1228 = vsyncpa [#allocation3], 1 }
 0x217   :  { %1229 = vsyncpa [#allocation6], 1 }
 0x218   :  { %1230 = vsyncpa [#allocation4], 1 }

</bundles_post_ra>
